<compile_context>
chip_gen: v6e
topology: v6e:2x2x1
jax: 0.10.0
libtpu: 0.0.40
codegen_flags: <defaults>
</compile_context>

<pallas_src>
import functools
import math

import jax
import jax.numpy as jnp
import numpy as np
from jax.experimental import pallas as pl
from jax.experimental.pallas import tpu as pltpu


# ---------------- padding helpers (ported verbatim from the PyTorch module, no torch) ----
def as_tup2(v):
    if isinstance(v, int):
        return (v, v)
    if len(v) == 1:
        return (v[0], v[0])
    if len(v) == 2:
        return tuple(v)
    raise ValueError(f"Invalid 2-tuple-like object v={v!r}")


def output_size(input_size, kernel_size, stride, padding_begin, padding_end, dilation):
    return math.floor(
        (input_size + padding_begin + padding_end - dilation * (kernel_size - 1) - 1) / stride + 1
    )


def calculate_same(kernel_size, dilation):
    zero_out = output_size(0, kernel_size, 1, 0, 0, dilation)
    padding_total = -zero_out
    assert padding_total % dilation == 0
    padding = padding_total // dilation
    pad_beg = padding // 2 * dilation
    pad_end = (padding // 2 + padding % 2) * dilation
    same_out = output_size(0, kernel_size, 1, pad_beg, pad_end, dilation)
    assert same_out == 0, f"calculate_same failed! same_out={same_out!r}"
    return (pad_beg, pad_end)


def get_padding(padding, dil_x, dil_y, krn_ys, krn_xs):
    if isinstance(padding, str):
        if padding == "valid":
            return ((0, 0), (0, 0))
        if padding == "same":
            return (calculate_same(krn_ys, dil_y), calculate_same(krn_xs, dil_x))
        raise ValueError(f"Invalid padding={padding!r}")
    pad_y, pad_x = as_tup2(padding)
    return (as_tup2(pad_y), as_tup2(pad_x))


# ---------------- Pallas kernel ----------------------------------------------------------
def _maxpool_kernel(x_ref, o_ref, *scratch, KH, KW, sy, sx, dy, dx,
                    TH, Wout, pyb, pxb, H, W, pad_val, use_scratch):
    # x_ref : (TC, H, W)        unpadded input channel tile (resident across row tiles)
    # o_ref : (TC, TH, Wout)    one block of output rows, W on lanes (lane-dense)
    # scratch[0] (optional): (TC, HpS, WpE) padded copy, rebuilt once per channel tile
    t = pl.program_id(1)

    if use_scratch:
        pad_ref = scratch[0]

        @pl.when(t == 0)
        def _():
            # Pad in VMEM (no HBM pad pass).  pad_val is -inf (symmetric padding path,
            # matching F.max_pool2d) or 0 (asymmetric path, matching torch.constant_pad_nd).
            pad_ref[...] = jnp.full(pad_ref.shape, pad_val, pad_ref.dtype)
            pad_ref[:, pyb:pyb + H, pxb:pxb + W] = x_ref[...]

        src = pad_ref
    else:
        src = x_ref

    row_base = t * (TH * sy)  # first padded input row used by this output-row tile
    acc = None
    for ky in range(KH):                       # static, small
        rstart = row_base + ky * dy
        if sy == 1:
            rows = src[:, pl.ds(rstart, TH), :]               # (TC, TH, WpE)
        else:
            rows = src[:, pl.ds(rstart, TH, stride=sy), :]    # sublane-strided read
        for kx in range(KW):                   # unit-stride lane slices + running max (VPU)
            off = kx * dx
            slab = rows[:, :, off:off + Wout]
            acc = slab if acc is None else jnp.maximum(acc, slab)
    o_ref[...] = acc.astype(o_ref.dtype)


# ---------------- wrapper (== TorchMaxPool2D.forward) ------------------------------------
def maxpool2d(img, kernel_size, stride=None, padding=0, dilation=1):
    ky, kx = as_tup2(kernel_size)
    stride = kernel_size if stride is None else stride
    sy, sx = as_tup2(stride)
    dy, dx = as_tup2(dilation)
    (pyb, pye), (pxb, pxe) = get_padding(padding, dx, dy, ky, kx)

    N, C, H, W = img.shape
    dtype = img.dtype
    Hp = H + pyb + pye
    Wp = W + pxb + pxe
    Ho = (Hp - dy * (ky - 1) - 1) // sy + 1
    Wo = (Wp - dx * (kx - 1) - 1) // sx + 1

    if pyb == pye and pxb == pxe:
        # symmetric padding goes to F.max_pool2d, which implicitly pads with -inf
        if jnp.issubdtype(dtype, jnp.floating):
            pad_val = float("-inf")
        else:
            pad_val = int(jnp.iinfo(dtype).min)
    else:
        # asymmetric padding goes through torch.constant_pad_nd, which pads with 0
        pad_val = 0

    NC = N * C
    x = img.reshape(NC, H, W)                       # free reshape, no transpose

    # --- tiling choices -------------------------------------------------------------
    TH = Ho if Ho <= 32 else 32                     # block of output rows per grid step
    num_t = -(-Ho // TH)

    # kernel output width: Wo directly if sx==1, else contiguous kx-max width
    Wout = Wo if sx == 1 else (Wo - 1) * sx + 1

    # padded-scratch geometry (covers rounded-up row tiles so no OOB reads)
    HpS = max((num_t * TH - 1) * sy + dy * (ky - 1) + 1, Hp)
    WpE = Wp
    use_scratch = not (pyb == 0 and pye == 0 and pxb == 0 and pxe == 0 and HpS == H)

    # channel-tile size: biggest divisor of N*C fitting a conservative VMEM budget
    itemsize = jnp.dtype(dtype).itemsize
    per_c = (2 * H * W + (HpS * WpE if use_scratch else 0) + 2 * TH * Wout) * itemsize
    budget = 10 * (1 << 20)                          # safe under default scoped VMEM everywhere
    tc_cap = int(max(1, min(NC, budget // max(per_c, 1))))
    TC = 1
    for d in range(1, tc_cap + 1):
        if NC % d == 0:
            TC = d
    num_c = NC // TC

    kern = functools.partial(
        _maxpool_kernel, KH=ky, KW=kx, sy=sy, sx=sx, dy=dy, dx=dx,
        TH=TH, Wout=Wout, pyb=pyb, pxb=pxb, H=H, W=W,
        pad_val=pad_val, use_scratch=use_scratch,
    )
    scratch_shapes = [pltpu.VMEM((TC, HpS, WpE), dtype)] if use_scratch else []

    out_full = pl.pallas_call(
        kern,
        out_shape=jax.ShapeDtypeStruct((NC, Ho, Wout), dtype),
        grid_spec=pltpu.PrefetchScalarGridSpec(
            num_scalar_prefetch=0,
            grid=(num_c, num_t),
            in_specs=[pl.BlockSpec((TC, H, W), lambda c, t: (c, 0, 0))],   # resident per c-tile
            out_specs=pl.BlockSpec((TC, TH, Wout), lambda c, t: (c, t, 0)),
            scratch_shapes=scratch_shapes,
        ),
        compiler_params=pltpu.CompilerParams(
            dimension_semantics=("parallel", "arbitrary")),
    )(x)

    if sx > 1:
        # TODO(synk): lane-strided subsample has no robust in-kernel Pallas/Mosaic lowering;
        # finish the stride-sx selection with a single XLA strided slice on the minor dim.
        out_full = out_full[:, :, ::sx]

    return out_full.reshape(N, C, Ho, Wo)


# ---------------- pure-JAX reference for validation --------------------------------------
def maxpool2d_ref(img, kernel_size, stride=None, padding=0, dilation=1):
    ky, kx = as_tup2(kernel_size)
    stride = kernel_size if stride is None else stride
    sy, sx = as_tup2(stride)
    dy, dx = as_tup2(dilation)
    (pyb, pye), (pxb, pxe) = get_padding(padding, dx, dy, ky, kx)
    pad_val = -jnp.inf if (pyb == pye and pxb == pxe) else 0.0
    xp = jnp.pad(img, ((0, 0), (0, 0), (pyb, pye), (pxb, pxe)), constant_values=pad_val)
    return jax.lax.reduce_window(
        xp, -jnp.inf, jax.lax.max,
        window_dimensions=(1, 1, ky, kx),
        window_strides=(1, 1, sy, sx),
        padding=((0, 0),) * 4,
        window_dilation=(1, 1, dy, dx),
    )


if __name__ == "__main__":
    key = jax.random.PRNGKey(0)
    x = jax.random.normal(key, (2, 4, 16, 16), dtype=jnp.float32)

    configs = [
        dict(kernel_size=2),                                   # stride defaults to kernel_size
        dict(kernel_size=3, stride=1, padding="same"),         # symmetric (-inf) padding path
        dict(kernel_size=(3, 2), stride=(2, 1),
             padding=((1, 0), (0, 1)), dilation=(1, 2)),       # asymmetric (zero) padding path
    ]
    for cfg in configs:
        out = jax.block_until_ready(maxpool2d(x, **cfg))
        ref = maxpool2d_ref(x, **cfg)
        np.testing.assert_allclose(np.asarray(out), np.asarray(ref), rtol=0, atol=0)

    print("KERNEL_OK")
</pallas_src>

<mosaic_0001>
module attributes {stable_mosaic.version = 11 : i64} {
  func.func @_maxpool_kernel(%arg0: i32, %arg1: i32, %arg2: memref<8x16x16xf32, #tpu.memory_space<vmem>>, %arg3: memref<8x8x15xf32, #tpu.memory_space<vmem>>) attributes {dimension_semantics = [#tpu.dimension_semantics<parallel>, #tpu.dimension_semantics<arbitrary>], iteration_bounds = array<i64: 1, 1>, scalar_prefetch = 0 : i64, scratch_operands = 0 : i64, tpu.core_type = #tpu.core_type<tc>, window_params = [{transform_indices = @transform_0, window_bounds = array<i64: 8, 16, 16>}, {transform_indices = @transform_1, window_bounds = array<i64: 8, 8, 15>}]} {
    %c16_i32 = arith.constant 16 : i32
    %0 = arith.muli %arg1, %c16_i32 : i32
    %c0_i32 = arith.constant 0 : i32
    %1 = arith.addi %0, %c0_i32 : i32
    %c0 = arith.constant 0 : index
    %2 = arith.index_cast %1 : i32 to index
    %c0_0 = arith.constant 0 : index
    %3 = tpu.strided_load %arg2[%c0, %2, %c0_0] {strides = array<i32: 1, 2, 1>} : memref<8x16x16xf32, #tpu.memory_space<vmem>>, vector<8x8x16xf32>
    %4 = vector.extract_strided_slice %3 {offsets = [0, 0, 0], sizes = [8, 8, 15], strides = [1, 1, 1]} : vector<8x8x16xf32> to vector<8x8x15xf32>
    %5 = vector.extract_strided_slice %3 {offsets = [0, 0, 1], sizes = [8, 8, 15], strides = [1, 1, 1]} : vector<8x8x16xf32> to vector<8x8x15xf32>
    %6 = arith.maximumf %4, %5 : vector<8x8x15xf32>
    %c1_i32 = arith.constant 1 : i32
    %7 = arith.addi %0, %c1_i32 : i32
    %c0_1 = arith.constant 0 : index
    %8 = arith.index_cast %7 : i32 to index
    %c0_2 = arith.constant 0 : index
    %9 = tpu.strided_load %arg2[%c0_1, %8, %c0_2] {strides = array<i32: 1, 2, 1>} : memref<8x16x16xf32, #tpu.memory_space<vmem>>, vector<8x8x16xf32>
    %10 = vector.extract_strided_slice %9 {offsets = [0, 0, 0], sizes = [8, 8, 15], strides = [1, 1, 1]} : vector<8x8x16xf32> to vector<8x8x15xf32>
    %11 = arith.maximumf %6, %10 : vector<8x8x15xf32>
    %12 = vector.extract_strided_slice %9 {offsets = [0, 0, 1], sizes = [8, 8, 15], strides = [1, 1, 1]} : vector<8x8x16xf32> to vector<8x8x15xf32>
    %13 = arith.maximumf %11, %12 : vector<8x8x15xf32>
    %c0_3 = arith.constant 0 : index
    %c0_4 = arith.constant 0 : index
    %c0_5 = arith.constant 0 : index
    %14 = vector.load %arg3[%c0_3, %c0_4, %c0_5] : memref<8x8x15xf32, #tpu.memory_space<vmem>>, vector<8x8x15xf32>
    tpu.vector_store %arg3[%c0_3, %c0_4, %c0_5], %13 {strides = array<i32>} : memref<8x8x15xf32, #tpu.memory_space<vmem>>, vector<8x8x15xf32>,
    return
  }
  func.func @transform_0(%arg0: i32, %arg1: i32) -> (i32, i32, i32) {
    %c0_i32 = arith.constant 0 : i32
    %c0_i32_0 = arith.constant 0 : i32
    %c0_i32_1 = arith.constant 0 : i32
    return %arg0, %c0_i32, %c0_i32_0 : i32, i32, i32
  }
  func.func @transform_1(%arg0: i32, %arg1: i32) -> (i32, i32, i32) {
    %c0_i32 = arith.constant 0 : i32
    %c0_i32_0 = arith.constant 0 : i32
    return %arg0, %arg1, %c0_i32 : i32, i32, i32
  }
}

</mosaic_0001>

<bundles_post_ra>
// kernel: tpu_custom_call.1
= control target key start
LH: loop header
LB: loop body
LE: loop exit
PB: predicated region body
PF: predicated region fallthrough
CT: control target
= control target key end

     0   :  { %6 = vsyncpa [#allocation3], 0  ;;  %s271_s0 = inlined_call_operand.hbm [shape: f32[8,16,16], index: 0, kind: input, shape index: {}]   ;;  %s272_s1 = inlined_call_operand.hbm [shape: f32[8,8,15], index: 1, kind: output, shape index: {}]  }
   0x1   :  { %7 = vsyncpa [#allocation4], 0  ;;  %s228_s6 = smov [#allocation2]  }
   0x2   :  { %s13_s7 = sshll.u32 %s228_s6, 4  ;;  %s14_s7 = int_to_ptr.vmem [resolvable:$true] %s13_s7 }
   0x3   :  { %s192_s8 = scalar_lea.vmem %s14_s7, 2048  ;;  %p197_p1 = scmp.lt.s32.totalorder %s14_s7, %s14_s7 }
   0x4   :  { %p193_p0 = scmp.ne.s32.totalorder %s14_s7, %s192_s8  ;;  %p198_p2 = scmp.lt.s32.totalorder %s192_s8, %s192_s8 }
   0x6   :  { %p199_p3 = por %p198_p2, %p197_p1 }
   0x8   :  { %p200_p4 = pnand %p199_p3, %p193_p0 }
   0xa   :  { %203 = shalt.err (!%p200_p4)
}
   0xb   :  { %s229_s9 = smov 128   ;;  %s230_s10 = smov 8  }
   0xc   :  { %19 = dma.hbm_to_vmem [thread:$0]  %s271_s0, 2048, %s14_s7, [#allocation3], %s229_s9, %s229_s9, %s230_s10  }
   0xd   :  { %224 = dma.done.wait [#allocation3], 2048  }
   0xe   :  { %225 = vsyncadd [#allocation3], 4294965248  ;;  %v29_v0 = vld [vmem:[#allocation2 + $0x20] ss:$2 sm:$0xff]  ;;  %s231_s13 = smov 127   ;;  %vm145_vm0 = vcmask 121856  }
   0xf   :  { %v25_v1 = vld [vmem:[#allocation2] ss:$2 sm:$0xff]  ;;  %52 = vrot.lane.b32.xlu1 %v29_v0, %s231_s13  ;;  %v31_v2 = vld [vmem:[#allocation2 + $0x30] ss:$2 sm:$0xff]  ;;  %v84_v8 = vld [vmem:[#allocation2 + $0x11] ss:$2 sm:$0xff] }
  0x10   :  { %48 = vrot.lane.b32.xlu0 %v25_v1, %s231_s13  ;;  %v27_v3 = vld [vmem:[#allocation2 + $0x10] ss:$2 sm:$0xff]  ;;  %v33_v5 = vld [vmem:[#allocation2 + $0x40] ss:$2 sm:$0xff]  ;;  %v82_v9 = vld [vmem:[#allocation2 + $0x1] ss:$2 sm:$0xff] }
  0x11   :  { %v35_v4 = vld [vmem:[#allocation2 + $0x50] ss:$2 sm:$0xff]  ;;  %v251_v7 = vld [vmem:[#allocation2 + $0x60] ss:$2 sm:$0xff]  ;;  %v88_v10 = vld [vmem:[#allocation2 + $0x31] ss:$2 sm:$0xff] }
  0x12   :  { %v249_v6 = vld [vmem:[#allocation2 + $0x70] ss:$2 sm:$0xff]  ;;  %v86_v11 = vld [vmem:[#allocation2 + $0x21] ss:$2 sm:$0xff]  ;;  %v92_v12 = vld [vmem:[#allocation2 + $0x51] ss:$2 sm:$0xff] }
  0x13   :  { %54 = vrot.lane.b32.xlu1 %v31_v2, %s231_s13  ;;  %v90_v13 = vld [vmem:[#allocation2 + $0x41] ss:$2 sm:$0xff]  ;;  %v96_v14 = vld [vmem:[#allocation2 + $0x71] ss:$2 sm:$0xff]  ;;  %s232_s0 = smov [#allocation5]  }
  0x14   :  { %50 = vrot.lane.b32.xlu0 %v27_v3, %s231_s13  ;;  %v94_v15 = vld [vmem:[#allocation2 + $0x61] ss:$2 sm:$0xff]  ;;  %s159_s14 = sshll.u32 %s232_s0, 4  ;;  %s160_s14 = int_to_ptr.vmem [resolvable:$true] %s159_s14 }
  0x15   :  { %s204_s15 = scalar_lea.vmem %s160_s14, 1024  ;;  %p209_p6 = scmp.lt.s32.totalorder %s160_s14, %s160_s14 }
  0x16   :  { %p205_p5 = scmp.ne.s32.totalorder %s160_s14, %s204_s15  ;;  %p210_p7 = scmp.lt.s32.totalorder %s204_s15, %s204_s15 }
  0x17   :  { %58 = vrot.lane.b32.xlu1 %v35_v4, %s231_s13 }
  0x18   :  { %56 = vrot.lane.b32.xlu0 %v33_v5, %s231_s13  ;;  %p211_p8 = por %p210_p7, %p209_p6 }
  0x1a   :  { %p212_p9 = pnand %p211_p8, %p205_p5 }
  0x1b   :  { %62 = vrot.lane.b32.xlu1 %v249_v6, %s231_s13 }
  0x1c   :  { %60 = vrot.lane.b32.xlu0 %v251_v7, %s231_s13 }
  0x1f   :  { %115 = vrot.lane.b32.xlu1 %v84_v8, %s231_s13 }
  0x20   :  { %113 = vrot.lane.b32.xlu0 %v82_v9, %s231_s13 }
  0x23   :  { %119 = vrot.lane.b32.xlu1 %v88_v10, %s231_s13 }
  0x24   :  { %117 = vrot.lane.b32.xlu0 %v86_v11, %s231_s13 }
  0x27   :  { %123 = vrot.lane.b32.xlu1 %v92_v12, %s231_s13 }
  0x28   :  { %121 = vrot.lane.b32.xlu0 %v90_v13, %s231_s13 }
  0x2b   :  { %127 = vrot.lane.b32.xlu1 %v96_v14, %s231_s13 }
  0x2c   :  { %125 = vrot.lane.b32.xlu0 %v94_v15, %s231_s13 }
  0x81   :  { %v53_v16 = vpop.permute.xlu1 %52 }
  0x82   :  { %v49_v17 = vpop.permute.xlu0 %48  ;;  %v74_v26 = vmax.f32 %v29_v0, %v53_v16 }
  0x83   :  { %v72_v22 = vmax.f32 %v25_v1, %v49_v17 }
  0x84   :  { %v99_v37 = vmax.f32 %v74_v26, %v86_v11 }
  0x85   :  { %v55_v18 = vpop.permute.xlu1 %54  ;;  %v97_v29 = vmax.f32 %v72_v22, %v82_v9 }
  0x86   :  { %v51_v19 = vpop.permute.xlu0 %50  ;;  %v75_v27 = vmax.f32 %v31_v2, %v55_v18 }
  0x87   :  { %v73_v23 = vmax.f32 %v27_v3, %v51_v19 }
  0x88   :  { %v100_v36 = vmax.f32 %v75_v27, %v88_v10 }
  0x89   :  { %v59_v20 = vpop.permute.xlu1 %58  ;;  %v98_v28 = vmax.f32 %v73_v23, %v84_v8 }
  0x8a   :  { %v57_v21 = vpop.permute.xlu0 %56  ;;  %v77_v34 = vmax.f32 %v35_v4, %v59_v20 }
  0x8b   :  { %v76_v35 = vmax.f32 %v33_v5, %v57_v21 }
  0x8c   :  { %v102_v44 = vmax.f32 %v77_v34, %v92_v12 }
  0x8d   :  { %v63_v24 = vpop.permute.xlu1 %62  ;;  %v101_v45 = vmax.f32 %v76_v35, %v90_v13 }
  0x8e   :  { %v61_v25 = vpop.permute.xlu0 %60  ;;  %v79_v42 = vmax.f32 %v249_v6, %v63_v24 }
  0x8f   :  { %v78_v43 = vmax.f32 %v251_v7, %v61_v25 }
  0x90   :  { %v104_v50 = vmax.f32 %v79_v42, %v96_v14 }
  0x91   :  { %v116_v30 = vpop.permute.xlu1 %115  ;;  %v103_v51 = vmax.f32 %v78_v43, %v94_v15 }
  0x92   :  { %v114_v31 = vpop.permute.xlu0 %113  ;;  %v138_v32 = vmax.f32 %v98_v28, %v116_v30 }
  0x93   :  { %v137_v33 = vmax.f32 %v97_v29, %v114_v31 }
  0x94   :  { %147 = vst.msk [vmem:[#allocation5 + $0x8] sm:$0xff] %vm145_vm0, %v138_v32 }
  0x95   :  { %146 = vst.msk [vmem:[#allocation5] sm:$0xff] %vm145_vm0, %v137_v33  ;;  %v120_v38 = vpop.permute.xlu1 %119 }
  0x96   :  { %v118_v39 = vpop.permute.xlu0 %117  ;;  %v140_v40 = vmax.f32 %v100_v36, %v120_v38 }
  0x97   :  { %v139_v41 = vmax.f32 %v99_v37, %v118_v39 }
  0x98   :  { %149 = vst.msk [vmem:[#allocation5 + $0x18] sm:$0xff] %vm145_vm0, %v140_v40 }
  0x99   :  { %148 = vst.msk [vmem:[#allocation5 + $0x10] sm:$0xff] %vm145_vm0, %v139_v41  ;;  %v124_v46 = vpop.permute.xlu1 %123 }
  0x9a   :  { %v122_v47 = vpop.permute.xlu0 %121  ;;  %v142_v48 = vmax.f32 %v102_v44, %v124_v46 }
  0x9b   :  { %v141_v49 = vmax.f32 %v101_v45, %v122_v47 }
  0x9c   :  { %151 = vst.msk [vmem:[#allocation5 + $0x28] sm:$0xff] %vm145_vm0, %v142_v48 }
  0x9d   :  { %150 = vst.msk [vmem:[#allocation5 + $0x20] sm:$0xff] %vm145_vm0, %v141_v49  ;;  %v128_v52 = vpop.permute.xlu1 %127 }
  0x9e   :  { %v126_v53 = vpop.permute.xlu0 %125  ;;  %v144_v54 = vmax.f32 %v104_v50, %v128_v52 }
  0x9f   :  { %v143_v55 = vmax.f32 %v103_v51, %v126_v53 }
  0xa0   :  { %153 = vst.msk [vmem:[#allocation5 + $0x38] sm:$0xff] %vm145_vm0, %v144_v54 }
  0xa1   :  { %152 = vst.msk [vmem:[#allocation5 + $0x30] sm:$0xff] %vm145_vm0, %v143_v55 }
  0xa2   :  { %215 = shalt.err (!%p212_p9)
}
  0xa3   :  { %165 = dma.vmem_to_hbm [thread:$0]  %s160_s14, 1024, %s272_s1, [#allocation4], %s229_s9, %s229_s9, %s230_s10  }
  0xa4   :  { %226 = dma.done.wait [#allocation4], 1024  }
  0xa5   :  { %227 = vsyncadd [#allocation4], 4294966272 }
  0xa6   :  { %169 = vsyncpa [#allocation3], 1 }
  0xa7   :  { %170 = vsyncpa [#allocation4], 1 }

</bundles_post_ra>
